<compile_context>
chip_gen: v7x
topology: tpu7x:2x2x1
jax: 0.10.0
libtpu: 0.0.40
codegen_flags: <defaults>
</compile_context>

<pallas_src>
import functools

import jax
import jax.numpy as jnp
from jax.experimental import pallas as pl
from jax.experimental.pallas import tpu as pltpu


def _gauss_kernel(x_ref, z_ref, o_ref, *, c0, c1):
    # c0 = sig_b**2, c1 = sig_W / din  (pre-folded Python floats)
    # Single EUP exp; two VALU ops.  Compute in f32 (safe on v5e even for bf16
    # inputs), store in the output dtype.
    x = x_ref[...].astype(jnp.float32)
    z = z_ref[...].astype(jnp.float32)
    o_ref[...] = jnp.exp(z - (c0 + c1 * x * x)).astype(o_ref.dtype)


def gauss_activation(x, z, *, sig_b, sig_w, din=1, target_tile_bytes=1 << 20):
    """Elementwise Gauss activation.  x, z: arrays of identical shape/dtype."""
    assert x.shape == z.shape, "x and z must have the same shape"
    orig_shape = x.shape
    n_elem = x.size

    # Pick a lane-dense 2D factorization: lanes is the widest of these that
    # divides the element count (keeps output stores unmasked / lane-dense).
    lanes = None
    for cand in (1024, 512, 256, 128):
        if n_elem % cand == 0:
            lanes = cand
            break
    assert lanes is not None, "total element count must be a multiple of 128"
    m = n_elem // lanes

    # Tile rows: aim for ~target_tile_bytes per buffer (2 in + 1 out, double
    # buffered -> ~6x that in VMEM, well under v5e's 16 MiB scoped default).
    itemsize = jnp.dtype(x.dtype).itemsize
    block_rows = max(8, target_tile_bytes // (lanes * itemsize))
    block_rows = int(block_rows) - int(block_rows) % 8  # multiple of 8
    if block_rows >= m:
        block_rows = m  # single full-array block (always a legal block shape)
    grid_m = pl.cdiv(m, block_rows)  # ragged last block handled by Pallas

    x2 = x.reshape(m, lanes)
    z2 = z.reshape(m, lanes)

    c0 = float(sig_b) ** 2
    c1 = float(sig_w) / float(din)
    kernel = functools.partial(_gauss_kernel, c0=c0, c1=c1)

    out2 = pl.pallas_call(
        kernel,
        out_shape=jax.ShapeDtypeStruct((m, lanes), x.dtype),
        grid_spec=pltpu.PrefetchScalarGridSpec(
            num_scalar_prefetch=0,
            grid=(grid_m,),
            in_specs=[
                pl.BlockSpec((block_rows, lanes), lambda i: (i, 0)),
                pl.BlockSpec((block_rows, lanes), lambda i: (i, 0)),
            ],
            out_specs=pl.BlockSpec((block_rows, lanes), lambda i: (i, 0)),
        ),
        compiler_params=pltpu.CompilerParams(
            # single axis marked parallel so v7x can shard it across its 2 TCs
            dimension_semantics=("parallel",)
        ),
    )(x2, z2)

    return out2.reshape(orig_shape)


def gauss_activation_ref(x, z, *, sig_b, sig_w, din=1):
    numerator = jnp.exp(z)
    denominator = jnp.sqrt(jnp.exp(2.0 * (sig_b**2 + sig_w / din * x**2)))
    return numerator / denominator


if __name__ == "__main__":
    # Module hyperparameters (deterministic, set in-script).
    sig_b = 0.5
    sig_w = 1.5
    din = 1

    # Small NCHW inputs, consistent with typical conv-activation usage.
    key = jax.random.PRNGKey(0)
    kx, kz = jax.random.split(key)
    shape = (2, 4, 16, 16)  # layout: NCHW
    x = jax.random.normal(kx, shape, dtype=jnp.float32)
    z = jax.random.normal(kz, shape, dtype=jnp.float32)

    out = gauss_activation(x, z, sig_b=sig_b, sig_w=sig_w, din=din)
    out = jax.block_until_ready(out)

    ref = gauss_activation_ref(x, z, sig_b=sig_b, sig_w=sig_w, din=din)
    assert out.shape == shape and out.dtype == x.dtype
    assert jnp.allclose(out, ref, rtol=1e-5, atol=1e-5), "mismatch vs reference"

    print("KERNEL_OK")
</pallas_src>

<mosaic_0001>
module attributes {stable_mosaic.version = 11 : i64} {
  func.func @_gauss_kernel(%arg0: i32, %arg1: memref<2x1024xf32, #tpu.memory_space<vmem>>, %arg2: memref<2x1024xf32, #tpu.memory_space<vmem>>, %arg3: memref<2x1024xf32, #tpu.memory_space<vmem>>) attributes {dimension_semantics = [#tpu.dimension_semantics<parallel>], iteration_bounds = array<i64: 1>, scalar_prefetch = 0 : i64, scratch_operands = 0 : i64, tpu.core_type = #tpu.core_type<tc>, window_params = [{transform_indices = @transform_0, window_bounds = array<i64: 2, 1024>}, {transform_indices = @transform_1, window_bounds = array<i64: 2, 1024>}, {transform_indices = @transform_2, window_bounds = array<i64: 2, 1024>}]} {
    %c0 = arith.constant 0 : index
    %c0_0 = arith.constant 0 : index
    %0 = vector.load %arg1[%c0, %c0_0] : memref<2x1024xf32, #tpu.memory_space<vmem>>, vector<2x1024xf32>
    %c0_1 = arith.constant 0 : index
    %c0_2 = arith.constant 0 : index
    %1 = vector.load %arg2[%c0_1, %c0_2] : memref<2x1024xf32, #tpu.memory_space<vmem>>, vector<2x1024xf32>
    %cst = arith.constant 1.500000e+00 : f32
    %2 = vector.broadcast %cst : f32 to vector<2x1024xf32>
    %3 = arith.mulf %2, %0 : vector<2x1024xf32>
    %4 = arith.mulf %3, %0 : vector<2x1024xf32>
    %cst_3 = arith.constant 2.500000e-01 : f32
    %5 = vector.broadcast %cst_3 : f32 to vector<2x1024xf32>
    %6 = arith.addf %5, %4 : vector<2x1024xf32>
    %7 = arith.subf %1, %6 : vector<2x1024xf32>
    %8 = math.exp %7 : vector<2x1024xf32>
    %c0_4 = arith.constant 0 : index
    %c0_5 = arith.constant 0 : index
    %9 = vector.load %arg3[%c0_4, %c0_5] : memref<2x1024xf32, #tpu.memory_space<vmem>>, vector<2x1024xf32>
    tpu.vector_store %arg3[%c0_4, %c0_5], %8 {strides = array<i32>} : memref<2x1024xf32, #tpu.memory_space<vmem>>, vector<2x1024xf32>,
    return
  }
  func.func @transform_0(%arg0: i32) -> (i32, i32) {
    %c0_i32 = arith.constant 0 : i32
    %c0_i32_0 = arith.constant 0 : i32
    return %arg0, %c0_i32 : i32, i32
  }
  func.func @transform_1(%arg0: i32) -> (i32, i32) {
    %c0_i32 = arith.constant 0 : i32
    %c0_i32_0 = arith.constant 0 : i32
    return %arg0, %c0_i32 : i32, i32
  }
  func.func @transform_2(%arg0: i32) -> (i32, i32) {
    %c0_i32 = arith.constant 0 : i32
    %c0_i32_0 = arith.constant 0 : i32
    return %arg0, %c0_i32 : i32, i32
  }
}

</mosaic_0001>

<bundles_post_ra>
// kernel: tpu_custom_call.1
= control target key start
LH: loop header
LB: loop body
LE: loop exit
PB: predicated region body
PF: predicated region fallthrough
CT: control target
= control target key end

     0   :  { %7 = vsyncpa [#allocation3], 0  ;;  %s203_s0 = inlined_call_operand.hbm [shape: f32[2,1024], index: 0, kind: input, shape index: {}]   ;;  %s204_s1 = inlined_call_operand.hbm [shape: f32[2,1024], index: 1, kind: input, shape index: {}]   ;;  %s205_s2 = inlined_call_operand.hbm [shape: f32[2,1024], index: 2, kind: output, shape index: {}]  }
   0x1   :  { %8 = vsyncpa [#allocation6], 0 }
   0x2   :  { %9 = vsyncpa [#allocation4], 0  ;;  %s149_s9 = smov [#allocation2]   ;;  %s150_s11 = smov [#allocation5]  }
   0x3   :  { %s16_s10 = sshll.u32 %s149_s9, 4  ;;  %s26_s12 = sshll.u32 %s150_s11, 4  ;;  %s17_s10 = int_to_ptr.vmem [resolvable:$true] %s16_s10  ;;  %s27_s12 = int_to_ptr.vmem [resolvable:$true] %s26_s12 }
   0x4   :  { %s77_s15 = scalar_lea.hbm %s203_s0, 256 }
   0x5   :  { %p78_p0 = scmp.ne.s32.totalorder %s203_s0, %s77_s15  ;;  %p81_p1 = scmp.lt.u32.totalorder %s77_s15, %s203_s0 }
   0x7   :  { %p83_p2 = pnand %p81_p1, %p78_p0 }
   0x9   :  { %86 = shalt.err (!%p83_p2)
}
   0xa   :  { %s87_s20 = scalar_lea.vmem %s17_s10, 256  ;;  %p92_p4 = scmp.lt.s32.totalorder %s17_s10, %s17_s10 }
   0xb   :  { %p88_p3 = scmp.ne.s32.totalorder %s17_s10, %s87_s20  ;;  %p93_p5 = scmp.lt.s32.totalorder %s87_s20, %s87_s20 }
   0xd   :  { %p94_p6 = por %p93_p5, %p92_p4 }
   0xf   :  { %p95_p7 = pnand %p94_p6, %p88_p3 }
  0x11   :  { %98 = shalt.err (!%p95_p7)
}
  0x12   :  { %19 = dma.hbm_to_vmem [thread:$0]  %s203_s0, 256, %s17_s10, [#allocation3]  }
  0x13   :  { %s99_s25 = scalar_lea.hbm %s204_s1, 256 }
  0x14   :  { %p100_p8 = scmp.ne.s32.totalorder %s204_s1, %s99_s25  ;;  %p103_p9 = scmp.lt.u32.totalorder %s99_s25, %s204_s1 }
  0x16   :  { %p105_p10 = pnand %p103_p9, %p100_p8 }
  0x18   :  { %108 = shalt.err (!%p105_p10)
}
  0x19   :  { %s109_s30 = scalar_lea.vmem %s27_s12, 256  ;;  %p114_p12 = scmp.lt.s32.totalorder %s27_s12, %s27_s12 }
  0x1a   :  { %p110_p11 = scmp.ne.s32.totalorder %s27_s12, %s109_s30  ;;  %p115_p13 = scmp.lt.s32.totalorder %s109_s30, %s109_s30 }
  0x1c   :  { %p116_p0 = por %p115_p13, %p114_p12 }
  0x1e   :  { %p117_p1 = pnand %p116_p0, %p110_p11 }
  0x20   :  { %120 = shalt.err (!%p117_p1)
}
  0x21   :  { %29 = dma.hbm_to_vmem [thread:$0]  %s204_s1, 256, %s27_s12, [#allocation6]  }
  0x22   :  { %143 = dma.done.wait [#allocation3], 256  }
  0x23   :  { %144 = vsyncadd [#allocation3], 4294967040 }
  0x24   :  { %145 = dma.done.wait [#allocation6], 256  }
  0x25   :  { %146 = vsyncadd [#allocation6], 4294967040  ;;  %v36_v0 = vld [vmem:[#allocation2] sm:$0xff]  ;;  %v37_v1 = vld [vmem:[#allocation2 + $0x8] sm:$0xff]  ;;  %s151_s1 = smov [#allocation7]  }
  0x26   :  { %v40_v2 = vmul.f32 1.5, %v36_v0  ;;  %v41_v3 = vmul.f32 1.5, %v37_v1  ;;  %v38_v6 = vld [vmem:[#allocation5] sm:$0xff]  ;;  %v39_v7 = vld [vmem:[#allocation5 + $0x8] sm:$0xff]  ;;  %s60_s4 = sshll.u32 %s151_s1, 4  ;;  %s61_s4 = int_to_ptr.vmem [resolvable:$true] %s60_s4 }
  0x27   :  { %s121_s5 = scalar_lea.vmem %s61_s4, 256  ;;  %p126_p3 = scmp.lt.s32.totalorder %s61_s4, %s61_s4 }
  0x28   :  { %v42_v4 = vmul.f32 %v40_v2, %v36_v0  ;;  %v43_v5 = vmul.f32 %v41_v3, %v37_v1  ;;  %p122_p2 = scmp.ne.s32.totalorder %s61_s4, %s121_s5  ;;  %p127_p4 = scmp.lt.s32.totalorder %s121_s5, %s121_s5 }
  0x2a   :  { %v44_v8 = vadd.f32 0.25, %v42_v4  ;;  %v45_v9 = vadd.f32 0.25, %v43_v5  ;;  %p128_p5 = por %p127_p4, %p126_p3 }
  0x2c   :  { %v46_v10 = vsub.f32 %v38_v6, %v44_v8  ;;  %v47_v11 = vsub.f32 %v39_v7, %v45_v9  ;;  %p129_p6 = pnand %p128_p5, %p122_p2 }
  0x2e   :  { %v48_v12 = vmul.f32 1.442695, %v46_v10  ;;  %v50_v13 = vmul.f32 1.442695, %v47_v11 }
  0x30   :  { %73 = vpow2.f32 %v48_v12 }
  0x31   :  { %75 = vpow2.f32 %v50_v13 }
  0x3a   :  { %v74_v14 = vpop.eup %73 }
  0x3b   :  { %v76_v15 = vpop.eup %75  ;;  %52 = vst [vmem:[#allocation7] sm:$0xff] %v74_v14 }
  0x3c   :  { %53 = vst [vmem:[#allocation7 + $0x8] sm:$0xff] %v76_v15 }
  0x3d   :  { %132 = shalt.err (!%p129_p6)
}
  0x3e   :  { %s133_s8 = scalar_lea.hbm %s205_s2, 256 }
  0x3f   :  { %p134_p7 = scmp.ne.s32.totalorder %s205_s2, %s133_s8  ;;  %p137_p8 = scmp.lt.u32.totalorder %s133_s8, %s205_s2 }
  0x41   :  { %p139_p9 = pnand %p137_p8, %p134_p7 }
  0x43   :  { %142 = shalt.err (!%p139_p9)
}
  0x44   :  { %63 = dma.vmem_to_hbm [thread:$0]  %s61_s4, 256, %s205_s2, [#allocation4]  }
  0x45   :  { %147 = dma.done.wait [#allocation4], 256  }
  0x46   :  { %148 = vsyncadd [#allocation4], 4294967040 }
  0x47   :  { %67 = vsyncpa [#allocation3], 1 }
  0x48   :  { %68 = vsyncpa [#allocation6], 1 }
  0x49   :  { %69 = vsyncpa [#allocation4], 1 }

</bundles_post_ra>
